<compile_context>
chip_gen: v6e
topology: v6e:2x2x1
jax: 0.10.0
libtpu: 0.0.40
codegen_flags: <defaults>
</compile_context>

<pallas_src>
import math
import functools

import jax
import jax.numpy as jnp
from jax import lax
from jax.experimental import pallas as pl
from jax.experimental.pallas import tpu as pltpu


# ----------------------------------------------------------------------------
# Hardware / tiling helpers
# ----------------------------------------------------------------------------
@functools.lru_cache(maxsize=1)
def _tpu_vmem_bytes():
    """Physical VMEM capacity (bytes); conservative 64 MiB fallback (v7x)."""
    try:
        info = pltpu.get_tpu_info()
        for attr in ("vmem_capacity_bytes", "vmem_bytes", "vmem_size_bytes"):
            cap = getattr(info, attr, None)
            if cap:
                return int(cap)
    except Exception:
        pass
    return 64 * 1024 * 1024


def _pick_seq_tile(S, max_tile):
    """Largest divisor of S that is <= max_tile and a multiple of 8 (or S)."""
    for t in range(min(S, max_tile), 0, -1):
        if S % t == 0 and (t % 8 == 0 or t == S):
            return t
    return S


def _const_index_map(ndim):
    def im(*_):
        return (0,) * ndim
    return im


def _weight_spec(a, use_buffered):
    """Whole array resident in VMEM; constant block index (never re-fetched)."""
    idx = _const_index_map(a.ndim)
    if use_buffered:
        # Single-buffer: default pipelining would allocate 2x for a block that
        # is only ever fetched once.
        return pl.BlockSpec(a.shape, idx, pipeline_mode=pl.Buffered(1))
    return pl.BlockSpec(a.shape, idx)


# ----------------------------------------------------------------------------
# Pass 1: K/V projection (once per layer, head-major bf16 output)
# ----------------------------------------------------------------------------
def kv_project_kernel(x_ref, wk_ref, bk_ref, wv_ref, bv_ref,
                      k_out_ref, v_out_ref, *, h):
    xb = x_ref[0].astype(jnp.bfloat16)                       # (Ts, D)
    for i in range(h):                                       # h is small & static
        k = jnp.dot(xb, wk_ref[i], preferred_element_type=jnp.float32) + bk_ref[i]
        v = jnp.dot(xb, wv_ref[i], preferred_element_type=jnp.float32) + bv_ref[i]
        k_out_ref[0, i] = k.astype(jnp.bfloat16)
        v_out_ref[0, i] = v.astype(jnp.bfloat16)


def kv_project(x, wk, bk, wv, bv, *, h, use_buffered, vmem_limit):
    B, S, D = x.shape
    ts = _pick_seq_tile(S, 512)
    n_s = S // ts
    w_args = (wk, bk, wv, bv)

    kernel = functools.partial(kv_project_kernel, h=h)
    out_shape = (jax.ShapeDtypeStruct((B, h, S, D), jnp.bfloat16),
                 jax.ShapeDtypeStruct((B, h, S, D), jnp.bfloat16))
    return pl.pallas_call(
        kernel,
        out_shape=out_shape,
        grid=(B, n_s),
        in_specs=[pl.BlockSpec((1, ts, D), lambda b, s: (b, s, 0))]
                 + [_weight_spec(a, use_buffered) for a in w_args],
        out_specs=(pl.BlockSpec((1, h, ts, D), lambda b, s: (b, 0, s, 0)),
                   pl.BlockSpec((1, h, ts, D), lambda b, s: (b, 0, s, 0))),
        compiler_params=pltpu.CompilerParams(
            dimension_semantics=("parallel", "parallel"),
            vmem_limit_bytes=vmem_limit),
    )(x, *w_args)


# ----------------------------------------------------------------------------
# Pass 2: attention + Wo + residual/LN1 + FFN + residual/LN2 per query tile
# ----------------------------------------------------------------------------
def encoder_layer_kernel(xq_ref, k_ref, v_ref,
                         wq_ref, bq_ref, wo_ref, bo_ref, g1_ref, be1_ref,
                         w1_ref, b1_ref, w2_ref, b2_ref, g2_ref, be2_ref,
                         o_ref, *, h, dk, eps):
    xq = xq_ref[0]                                           # (Tq, D) f32
    xq_b = xq.astype(jnp.bfloat16)
    scale = 1.0 / math.sqrt(dk)

    # ---- per-head SDPA, head-major; Wo accumulated per head (no ctx scratch) ----
    acc = None
    for i in range(h):                                       # static unroll
        # Q projection for this tile only; scale folded into the (Tq, D) query.
        qi = (jnp.dot(xq_b, wq_ref[i], preferred_element_type=jnp.float32)
              + bq_ref[i]) * scale
        qi = qi.astype(jnp.bfloat16)                         # (Tq, D)
        ki = k_ref[0, i]                                     # (S, D) bf16
        vi = v_ref[0, i]                                     # (S, D) bf16
        # q @ k^T without materializing a transpose (contract dim 1 of both).
        s = lax.dot_general(qi, ki, (((1,), (1,)), ((), ())),
                            preferred_element_type=jnp.float32)   # (Tq, S) f32
        s = s - jnp.max(s, axis=-1, keepdims=True)
        p = jnp.exp(s)
        p = p * pl.reciprocal(jnp.sum(p, axis=-1, keepdims=True), approx=True)
        ctx = jnp.dot(p.astype(jnp.bfloat16), vi,
                      preferred_element_type=jnp.float32)         # (Tq, D) f32
        # Concat(head_0..head_{h-1}) @ Wo  ==  sum_i head_i @ Wo[i]
        term = jnp.dot(ctx.astype(jnp.bfloat16), wo_ref[i],
                       preferred_element_type=jnp.float32)
        acc = term if acc is None else acc + term
    mha = acc + bo_ref[...]

    # ---- residual + LayerNorm 1 (f32 statistics) ----
    r1 = xq + mha
    mu1 = jnp.mean(r1, axis=-1, keepdims=True)
    var1 = jnp.mean(jnp.square(r1 - mu1), axis=-1, keepdims=True)
    ln1 = (r1 - mu1) * lax.rsqrt(var1 + eps) * g1_ref[...] + be1_ref[...]

    # ---- FeedForward: ReLU(x W1 + b1) W2 + b2 (bf16 MXU operands, f32 accum) ----
    hid = jnp.dot(ln1.astype(jnp.bfloat16), w1_ref[...],
                  preferred_element_type=jnp.float32) + b1_ref[...]
    hid = jnp.maximum(hid, 0.0)
    ff = jnp.dot(hid.astype(jnp.bfloat16), w2_ref[...],
                 preferred_element_type=jnp.float32) + b2_ref[...]

    # ---- residual + LayerNorm 2 ----
    r2 = ln1 + ff
    mu2 = jnp.mean(r2, axis=-1, keepdims=True)
    var2 = jnp.mean(jnp.square(r2 - mu2), axis=-1, keepdims=True)
    ln2 = (r2 - mu2) * lax.rsqrt(var2 + eps) * g2_ref[...] + be2_ref[...]

    o_ref[0] = ln2.astype(o_ref.dtype)


def encoder_layer(x, p, *, h, dk, use_buffered, eps=1e-5):
    B, S, D = x.shape
    dff = p['w1'].shape[1]

    vmem_cap = _tpu_vmem_bytes()
    budget = int(vmem_cap * 0.85)                 # headroom for internal scratch
    max_tq = 512 if vmem_cap >= 96 * 1024 * 1024 else 256

    # ---- pass 1: K/V projected once per layer (reused by every query tile) ----
    k_all, v_all = kv_project(x, p['wk'], p['bk'], p['wv'], p['bv'],
                              h=h, use_buffered=use_buffered, vmem_limit=budget)

    w_args = (p['wq'], p['bq'], p['wo'], p['bo'], p['ln1_g'], p['ln1_b'],
              p['w1'], p['b1'], p['w2'], p['b2'], p['ln2_g'], p['ln2_b'])
    weight_bytes = sum(int(a.size) * a.dtype.itemsize for a in w_args)
    kv_bytes = 2 * h * S * D * 2                  # bf16 K + V, single copy

    def est_vmem(tq):
        act = (2 * tq * S + tq * dff + 10 * tq * D) * 4      # scores/p + FFN + misc
        io = 2 * (2 * tq * D * 4)                             # x tile + out, 2-buffered
        wb = weight_bytes * (1 if use_buffered else 2)
        return wb + 2 * kv_bytes + io + act

    cands = [t for t in range(min(S, max_tq), 0, -1)
             if S % t == 0 and (t % 8 == 0 or t == S)]
    if not cands:
        cands = [S]
    tq = next((t for t in cands if est_vmem(t) <= budget), cands[-1])
    n_q = S // tq

    kernel = functools.partial(encoder_layer_kernel, h=h, dk=dk, eps=eps)

    return pl.pallas_call(
        kernel,
        out_shape=jax.ShapeDtypeStruct((B, S, D), x.dtype),
        grid=(B, n_q),
        in_specs=[pl.BlockSpec((1, tq, D), lambda b, q: (b, q, 0)),        # query rows (f32)
                  pl.BlockSpec((1, h, S, D), lambda b, q: (b, 0, 0, 0)),   # K (bf16, head-major)
                  pl.BlockSpec((1, h, S, D), lambda b, q: (b, 0, 0, 0))]   # V (bf16, head-major)
                 + [_weight_spec(a, use_buffered) for a in w_args],
        out_specs=pl.BlockSpec((1, tq, D), lambda b, q: (b, q, 0)),
        compiler_params=pltpu.CompilerParams(
            dimension_semantics=("parallel", "parallel"),
            vmem_limit_bytes=budget),
    )(x, k_all, v_all, *w_args)


# ----------------------------------------------------------------------------
# Encoder stack (with a one-time probe of Buffered(1) weight specs)
# ----------------------------------------------------------------------------
_BUFFERED_WEIGHTS = None  # None = unknown, True/False once probed


def _encoder_forward(x, packed_layers, h, dk, use_buffered):
    for p in packed_layers:
        x = encoder_layer(x, p, h=h, dk=dk, use_buffered=use_buffered)
    return x


def encoder_pallas(x, packed_layers, *, h, dk):
    global _BUFFERED_WEIGHTS
    if _BUFFERED_WEIGHTS is None:
        base = jax.block_until_ready(_encoder_forward(x, packed_layers, h, dk, False))
        try:
            buf = jax.block_until_ready(_encoder_forward(x, packed_layers, h, dk, True))
            ok = bool(jnp.allclose(buf, base, atol=1e-5, rtol=1e-5))
        except Exception:
            ok = False
        _BUFFERED_WEIGHTS = ok
        return buf if ok else base
    return _encoder_forward(x, packed_layers, h, dk, _BUFFERED_WEIGHTS)


# ----------------------------------------------------------------------------
# Parameter init (torch-like layout, f32) and one-time packing for the kernel
# ----------------------------------------------------------------------------
def init_params(key, N, h, D, dff):
    layers = []
    s = 0.05
    for l in range(N):
        ks = jax.random.split(jax.random.fold_in(key, l), 16)
        p = dict(
            wq=jax.random.normal(ks[0], (h, D, D), jnp.float32) * s,
            bq=jax.random.normal(ks[1], (h, 1, D), jnp.float32) * s,
            wk=jax.random.normal(ks[2], (h, D, D), jnp.float32) * s,
            bk=jax.random.normal(ks[3], (h, 1, D), jnp.float32) * s,
            wv=jax.random.normal(ks[4], (h, D, D), jnp.float32) * s,
            bv=jax.random.normal(ks[5], (h, 1, D), jnp.float32) * s,
            wo=jax.random.normal(ks[6], (h, D, D), jnp.float32) * s,   # head-major rows of (h*D, D) Wo
            bo=jax.random.normal(ks[7], (1, D), jnp.float32) * s,
            ln1_g=1.0 + jax.random.normal(ks[8], (1, D), jnp.float32) * s,
            ln1_b=jax.random.normal(ks[9], (1, D), jnp.float32) * s,
            w1=jax.random.normal(ks[10], (D, dff), jnp.float32) * s,
            b1=jax.random.normal(ks[11], (1, dff), jnp.float32) * s,
            w2=jax.random.normal(ks[12], (dff, D), jnp.float32) * s,
            b2=jax.random.normal(ks[13], (1, D), jnp.float32) * s,
            ln2_g=1.0 + jax.random.normal(ks[14], (1, D), jnp.float32) * s,
            ln2_b=jax.random.normal(ks[15], (1, D), jnp.float32) * s,
        )
        layers.append(p)
    return layers


def pack_layer_params(p):
    """One-time packing: matmul weights -> bf16 (head-major), biases/LN stay f32."""
    bf16 = jnp.bfloat16
    return dict(
        wq=p['wq'].astype(bf16), bq=p['bq'],
        wk=p['wk'].astype(bf16), bk=p['bk'],
        wv=p['wv'].astype(bf16), bv=p['bv'],
        wo=p['wo'].astype(bf16), bo=p['bo'],
        ln1_g=p['ln1_g'], ln1_b=p['ln1_b'],
        w1=p['w1'].astype(bf16), b1=p['b1'],
        w2=p['w2'].astype(bf16), b2=p['b2'],
        ln2_g=p['ln2_g'], ln2_b=p['ln2_b'],
    )


# ----------------------------------------------------------------------------
# Pure-JAX reference (mirrors the PyTorch forward, f32)
# ----------------------------------------------------------------------------
def _layer_norm(x, g, b, eps=1e-5):
    mu = jnp.mean(x, axis=-1, keepdims=True)
    var = jnp.mean(jnp.square(x - mu), axis=-1, keepdims=True)
    return (x - mu) * jax.lax.rsqrt(var + eps) * g + b


def encoder_ref(x, layer_params, *, h, dk, eps=1e-5):
    D = x.shape[-1]
    for p in layer_params:
        heads = []
        for i in range(h):
            q = x @ p['wq'][i] + p['bq'][i]
            k = x @ p['wk'][i] + p['bk'][i]
            v = x @ p['wv'][i] + p['bv'][i]
            s = q @ jnp.swapaxes(k, -1, -2) / math.sqrt(dk)
            a = jax.nn.softmax(s, axis=-1)
            heads.append(a @ v)
        concat = jnp.concatenate(heads, axis=-1)              # (B, S, h*D)
        wo_full = p['wo'].reshape(h * D, D)
        mha = concat @ wo_full + p['bo']
        ln1 = _layer_norm(x + mha, p['ln1_g'], p['ln1_b'], eps)
        ff = jnp.maximum(ln1 @ p['w1'] + p['b1'], 0.0) @ p['w2'] + p['b2']
        x = _layer_norm(ln1 + ff, p['ln2_g'], p['ln2_b'], eps)
    return x


if __name__ == "__main__":
    B, S, D, H, N = 2, 8, 32, 2, 2          # batch, seq, dmodel, heads, layers
    dff = 4 * D
    dk = D // H

    key = jax.random.PRNGKey(0)
    kx, kp = jax.random.split(key)
    x = jax.random.normal(kx, (B, S, D), jnp.float32)
    raw_layers = init_params(kp, N, H, D, dff)
    packed_layers = [pack_layer_params(p) for p in raw_layers]   # one-time prep

    out = jax.block_until_ready(encoder_pallas(x, packed_layers, h=H, dk=dk))

    ref = encoder_ref(x, raw_layers, h=H, dk=dk)
    assert out.shape == (B, S, D)
    # bf16 MXU operands (f32 accumulation) + bf16 K/V stream + approx softmax
    # reciprocal => looser tolerance than a pure-f32 run; outputs are
    # LayerNorm'ed (O(1) magnitude).
    assert jnp.allclose(out, ref, atol=5e-2, rtol=5e-2), "mismatch vs reference"

    print("KERNEL_OK")
</pallas_src>

<mosaic_0001>
module attributes {stable_mosaic.version = 11 : i64} {
  func.func @kv_project_kernel(%arg0: i32, %arg1: i32, %arg2: memref<1x8x32xf32, #tpu.memory_space<vmem>>, %arg3: memref<2x32x32xbf16, #tpu.memory_space<vmem>>, %arg4: memref<2x1x32xf32, #tpu.memory_space<vmem>>, %arg5: memref<2x32x32xbf16, #tpu.memory_space<vmem>>, %arg6: memref<2x1x32xf32, #tpu.memory_space<vmem>>, %arg7: memref<1x2x8x32xbf16, #tpu.memory_space<vmem>>, %arg8: memref<1x2x8x32xbf16, #tpu.memory_space<vmem>>) attributes {dimension_semantics = [#tpu.dimension_semantics<parallel>, #tpu.dimension_semantics<parallel>], iteration_bounds = array<i64: 2, 1>, scalar_prefetch = 0 : i64, scratch_operands = 0 : i64, tpu.core_type = #tpu.core_type<tc>, window_params = [{transform_indices = @transform_0, window_bounds = array<i64: 1, 8, 32>}, {pipeline_mode = #tpu.pipeline_mode<synchronous>, transform_indices = @transform_1, window_bounds = array<i64: 2, 32, 32>}, {pipeline_mode = #tpu.pipeline_mode<synchronous>, transform_indices = @transform_2, window_bounds = array<i64: 2, 1, 32>}, {pipeline_mode = #tpu.pipeline_mode<synchronous>, transform_indices = @transform_3, window_bounds = array<i64: 2, 32, 32>}, {pipeline_mode = #tpu.pipeline_mode<synchronous>, transform_indices = @transform_4, window_bounds = array<i64: 2, 1, 32>}, {transform_indices = @transform_5, window_bounds = array<i64: 1, 2, 8, 32>}, {transform_indices = @transform_6, window_bounds = array<i64: 1, 2, 8, 32>}]} {
    %c0 = arith.constant 0 : index
    %c0_0 = arith.constant 0 : index
    %c0_1 = arith.constant 0 : index
    %0 = vector.load %arg2[%c0, %c0_0, %c0_1] : memref<1x8x32xf32, #tpu.memory_space<vmem>>, vector<1x8x32xf32>
    %1 = vector.shape_cast %0 : vector<1x8x32xf32> to vector<8x32xf32>
    %2 = arith.truncf %1 : vector<8x32xf32> to vector<8x32xbf16>
    %c0_2 = arith.constant 0 : index
    %c0_3 = arith.constant 0 : index
    %c0_4 = arith.constant 0 : index
    %3 = vector.load %arg3[%c0_2, %c0_3, %c0_4] : memref<2x32x32xbf16, #tpu.memory_space<vmem>>, vector<1x32x32xbf16>
    %4 = vector.shape_cast %3 : vector<1x32x32xbf16> to vector<32x32xbf16>
    %cst = arith.constant dense<0.000000e+00> : vector<8x32xf32>
    %5 = tpu.matmul %2, %4, %cst {dimension_numbers = #tpu.dot_dimension_numbers<[1], [0], [0], [1], [0, 0, 1, 1], [], []>} : vector<8x32xbf16>, vector<32x32xbf16>, vector<8x32xf32> -> vector<8x32xf32>
    %c0_5 = arith.constant 0 : index
    %c0_6 = arith.constant 0 : index
    %c0_7 = arith.constant 0 : index
    %6 = vector.load %arg4[%c0_5, %c0_6, %c0_7] : memref<2x1x32xf32, #tpu.memory_space<vmem>>, vector<1x1x32xf32>
    %7 = vector.shape_cast %6 : vector<1x1x32xf32> to vector<1x32xf32>
    %8 = vector.broadcast %7 : vector<1x32xf32> to vector<8x32xf32>
    %9 = arith.addf %5, %8 : vector<8x32xf32>
    %c0_8 = arith.constant 0 : index
    %c0_9 = arith.constant 0 : index
    %c0_10 = arith.constant 0 : index
    %10 = vector.load %arg5[%c0_8, %c0_9, %c0_10] : memref<2x32x32xbf16, #tpu.memory_space<vmem>>, vector<1x32x32xbf16>
    %11 = vector.shape_cast %10 : vector<1x32x32xbf16> to vector<32x32xbf16>
    %cst_11 = arith.constant dense<0.000000e+00> : vector<8x32xf32>
    %12 = tpu.matmul %2, %11, %cst_11 {dimension_numbers = #tpu.dot_dimension_numbers<[1], [0], [0], [1], [0, 0, 1, 1], [], []>} : vector<8x32xbf16>, vector<32x32xbf16>, vector<8x32xf32> -> vector<8x32xf32>
    %c0_12 = arith.constant 0 : index
    %c0_13 = arith.constant 0 : index
    %c0_14 = arith.constant 0 : index
    %13 = vector.load %arg6[%c0_12, %c0_13, %c0_14] : memref<2x1x32xf32, #tpu.memory_space<vmem>>, vector<1x1x32xf32>
    %14 = vector.shape_cast %13 : vector<1x1x32xf32> to vector<1x32xf32>
    %15 = vector.broadcast %14 : vector<1x32xf32> to vector<8x32xf32>
    %16 = arith.addf %12, %15 : vector<8x32xf32>
    %17 = arith.truncf %9 : vector<8x32xf32> to vector<8x32xbf16>
    %c0_15 = arith.constant 0 : index
    %c0_16 = arith.constant 0 : index
    %c0_17 = arith.constant 0 : index
    %c0_18 = arith.constant 0 : index
    %18 = vector.load %arg7[%c0_15, %c0_16, %c0_17, %c0_18] : memref<1x2x8x32xbf16, #tpu.memory_space<vmem>>, vector<1x1x8x32xbf16>
    %19 = vector.shape_cast %18 : vector<1x1x8x32xbf16> to vector<8x32xbf16>
    %20 = vector.shape_cast %17 : vector<8x32xbf16> to vector<1x1x8x32xbf16>
    tpu.vector_store %arg7[%c0_15, %c0_16, %c0_17, %c0_18], %20 {strides = array<i32>} : memref<1x2x8x32xbf16, #tpu.memory_space<vmem>>, vector<1x1x8x32xbf16>,
    %21 = arith.truncf %16 : vector<8x32xf32> to vector<8x32xbf16>
    %c0_19 = arith.constant 0 : index
    %c0_20 = arith.constant 0 : index
    %c0_21 = arith.constant 0 : index
    %c0_22 = arith.constant 0 : index
    %22 = vector.load %arg8[%c0_19, %c0_20, %c0_21, %c0_22] : memref<1x2x8x32xbf16, #tpu.memory_space<vmem>>, vector<1x1x8x32xbf16>
    %23 = vector.shape_cast %22 : vector<1x1x8x32xbf16> to vector<8x32xbf16>
    %24 = vector.shape_cast %21 : vector<8x32xbf16> to vector<1x1x8x32xbf16>
    tpu.vector_store %arg8[%c0_19, %c0_20, %c0_21, %c0_22], %24 {strides = array<i32>} : memref<1x2x8x32xbf16, #tpu.memory_space<vmem>>, vector<1x1x8x32xbf16>,
    %c1 = arith.constant 1 : index
    %c0_23 = arith.constant 0 : index
    %c0_24 = arith.constant 0 : index
    %25 = vector.load %arg3[%c1, %c0_23, %c0_24] : memref<2x32x32xbf16, #tpu.memory_space<vmem>>, vector<1x32x32xbf16>
    %26 = vector.shape_cast %25 : vector<1x32x32xbf16> to vector<32x32xbf16>
    %cst_25 = arith.constant dense<0.000000e+00> : vector<8x32xf32>
    %27 = tpu.matmul %2, %26, %cst_25 {dimension_numbers = #tpu.dot_dimension_numbers<[1], [0], [0], [1], [0, 0, 1, 1], [], []>} : vector<8x32xbf16>, vector<32x32xbf16>, vector<8x32xf32> -> vector<8x32xf32>
    %c1_26 = arith.constant 1 : index
    %c0_27 = arith.constant 0 : index
    %c0_28 = arith.constant 0 : index
    %28 = vector.load %arg4[%c1_26, %c0_27, %c0_28] : memref<2x1x32xf32, #tpu.memory_space<vmem>>, vector<1x1x32xf32>
    %29 = vector.shape_cast %28 : vector<1x1x32xf32> to vector<1x32xf32>
    %30 = vector.broadcast %29 : vector<1x32xf32> to vector<8x32xf32>
    %31 = arith.addf %27, %30 : vector<8x32xf32>
    %c1_29 = arith.constant 1 : index
    %c0_30 = arith.constant 0 : index
    %c0_31 = arith.constant 0 : index
    %32 = vector.load %arg5[%c1_29, %c0_30, %c0_31] : memref<2x32x32xbf16, #tpu.memory_space<vmem>>, vector<1x32x32xbf16>
    %33 = vector.shape_cast %32 : vector<1x32x32xbf16> to vector<32x32xbf16>
    %cst_32 = arith.constant dense<0.000000e+00> : vector<8x32xf32>
    %34 = tpu.matmul %2, %33, %cst_32 {dimension_numbers = #tpu.dot_dimension_numbers<[1], [0], [0], [1], [0, 0, 1, 1], [], []>} : vector<8x32xbf16>, vector<32x32xbf16>, vector<8x32xf32> -> vector<8x32xf32>
    %c1_33 = arith.constant 1 : index
    %c0_34 = arith.constant 0 : index
    %c0_35 = arith.constant 0 : index
    %35 = vector.load %arg6[%c1_33, %c0_34, %c0_35] : memref<2x1x32xf32, #tpu.memory_space<vmem>>, vector<1x1x32xf32>
    %36 = vector.shape_cast %35 : vector<1x1x32xf32> to vector<1x32xf32>
    %37 = vector.broadcast %36 : vector<1x32xf32> to vector<8x32xf32>
    %38 = arith.addf %34, %37 : vector<8x32xf32>
    %39 = arith.truncf %31 : vector<8x32xf32> to vector<8x32xbf16>
    %c0_36 = arith.constant 0 : index
    %c1_37 = arith.constant 1 : index
    %c0_38 = arith.constant 0 : index
    %c0_39 = arith.constant 0 : index
    %40 = vector.load %arg7[%c0_36, %c1_37, %c0_38, %c0_39] : memref<1x2x8x32xbf16, #tpu.memory_space<vmem>>, vector<1x1x8x32xbf16>
    %41 = vector.shape_cast %40 : vector<1x1x8x32xbf16> to vector<8x32xbf16>
    %42 = vector.shape_cast %39 : vector<8x32xbf16> to vector<1x1x8x32xbf16>
    tpu.vector_store %arg7[%c0_36, %c1_37, %c0_38, %c0_39], %42 {strides = array<i32>} : memref<1x2x8x32xbf16, #tpu.memory_space<vmem>>, vector<1x1x8x32xbf16>,
    %43 = arith.truncf %38 : vector<8x32xf32> to vector<8x32xbf16>
    %c0_40 = arith.constant 0 : index
    %c1_41 = arith.constant 1 : index
    %c0_42 = arith.constant 0 : index
    %c0_43 = arith.constant 0 : index
    %44 = vector.load %arg8[%c0_40, %c1_41, %c0_42, %c0_43] : memref<1x2x8x32xbf16, #tpu.memory_space<vmem>>, vector<1x1x8x32xbf16>
    %45 = vector.shape_cast %44 : vector<1x1x8x32xbf16> to vector<8x32xbf16>
    %46 = vector.shape_cast %43 : vector<8x32xbf16> to vector<1x1x8x32xbf16>
    tpu.vector_store %arg8[%c0_40, %c1_41, %c0_42, %c0_43], %46 {strides = array<i32>} : memref<1x2x8x32xbf16, #tpu.memory_space<vmem>>, vector<1x1x8x32xbf16>,
    return
  }
  func.func @transform_0(%arg0: i32, %arg1: i32) -> (i32, i32, i32) {
    %c0_i32 = arith.constant 0 : i32
    %c0_i32_0 = arith.constant 0 : i32
    return %arg0, %arg1, %c0_i32 : i32, i32, i32
  }
  func.func @transform_1(%arg0: i32, %arg1: i32) -> (i32, i32, i32) {
    %c0_i32 = arith.constant 0 : i32
    %c0_i32_0 = arith.constant 0 : i32
    %c0_i32_1 = arith.constant 0 : i32
    %c0_i32_2 = arith.constant 0 : i32
    return %c0_i32, %c0_i32_0, %c0_i32_1 : i32, i32, i32
  }
  func.func @transform_2(%arg0: i32, %arg1: i32) -> (i32, i32, i32) {
    %c0_i32 = arith.constant 0 : i32
    %c0_i32_0 = arith.constant 0 : i32
    %c0_i32_1 = arith.constant 0 : i32
    %c0_i32_2 = arith.constant 0 : i32
    return %c0_i32, %c0_i32_0, %c0_i32_1 : i32, i32, i32
  }
  func.func @transform_3(%arg0: i32, %arg1: i32) -> (i32, i32, i32) {
    %c0_i32 = arith.constant 0 : i32
    %c0_i32_0 = arith.constant 0 : i32
    %c0_i32_1 = arith.constant 0 : i32
    %c0_i32_2 = arith.constant 0 : i32
    return %c0_i32, %c0_i32_0, %c0_i32_1 : i32, i32, i32
  }
  func.func @transform_4(%arg0: i32, %arg1: i32) -> (i32, i32, i32) {
    %c0_i32 = arith.constant 0 : i32
    %c0_i32_0 = arith.constant 0 : i32
    %c0_i32_1 = arith.constant 0 : i32
    %c0_i32_2 = arith.constant 0 : i32
    return %c0_i32, %c0_i32_0, %c0_i32_1 : i32, i32, i32
  }
  func.func @transform_5(%arg0: i32, %arg1: i32) -> (i32, i32, i32, i32) {
    %c0_i32 = arith.constant 0 : i32
    %c0_i32_0 = arith.constant 0 : i32
    %c0_i32_1 = arith.constant 0 : i32
    return %arg0, %c0_i32, %arg1, %c0_i32_0 : i32, i32, i32, i32
  }
  func.func @transform_6(%arg0: i32, %arg1: i32) -> (i32, i32, i32, i32) {
    %c0_i32 = arith.constant 0 : i32
    %c0_i32_0 = arith.constant 0 : i32
    %c0_i32_1 = arith.constant 0 : i32
    return %arg0, %c0_i32, %arg1, %c0_i32_0 : i32, i32, i32, i32
  }
}

</mosaic_0001>

<bundles_post_ra>
// kernel: tpu_custom_call.1
= control target key start
LH: loop header
LB: loop body
LE: loop exit
PB: predicated region body
PF: predicated region fallthrough
CT: control target
= control target key end

     0   :  { %s1457_s0 = inlined_call_operand.hbm [shape: f32[2,8,32], index: 0, kind: input, shape index: {}]   ;;  %s1458_s1 = inlined_call_operand.hbm [shape: bf16[2,32,32], index: 1, kind: input, shape index: {}]   ;;  %s1459_s2 = inlined_call_operand.vmem [shape: f32[2,1,32], index: 2, kind: input, shape index: {}]   ;;  %s1460_s3 = inlined_call_operand.hbm [shape: bf16[2,32,32], index: 3, kind: input, shape index: {}]   ;;  %s1461_s4 = inlined_call_operand.vmem [shape: f32[2,1,32], index: 4, kind: input, shape index: {}]   ;;  %s1462_s5 = inlined_call_operand.hbm [shape: bf16[2,2,8,32], index: 5, kind: output, shape index: {0}]   ;;  %s1463_s6 = inlined_call_operand.hbm [shape: bf16[2,2,8,32], index: 6, kind: output, shape index: {1}]  }
   0x1   :  { %1467 = sst [smem:[#allocation15_spill]] %s1458_s1 }
   0x2   :  { %1468 = sst [smem:[#allocation16_spill]] %s1460_s3 }
   0x3   :  { %12 = vsyncpa [#allocation3], 0 }
   0x4   :  { %14 = vsyncpa [#allocation3 + $0x1], 0 }
   0x5   :  { %15 = vsyncpa [#allocation6], 0 }
   0x6   :  { %16 = vsyncpa [#allocation4], 0 }
   0x7   :  { %18 = vsyncpa [#allocation4 + $0x1], 0 }
   0x8   :  { %19 = vsyncpa [#allocation10], 0 }
   0x9   :  { %21 = vsyncpa [#allocation10 + $0x1], 0  ;;  %s1206_s21 = smov 0   ;;  %s1208_s22 = smov 0  }
   0xa   :  { %s1210_s23 = smov 0   ;;  %s1212_s24 = smov 0  }
   0xb   :  { %s1214_s25 = smov 0   ;;  %s1216_s26 = smov 0  }
   0xc LB: > { %s774_s27 = sadd.s32 4294967295, %s1158_s26   ;;  %s775_s28 = sadd.s32 4294967294, %s1158_s26   ;;  %s1158_s26 = sphi %s1216_s26, %s27_s26   ;;  %s1154_s25 = sphi %s1214_s25, %s1487_s25   ;;  %s1150_s24 = sphi %s1212_s24, %s1486_s24   ;;  %s1146_s23 = sphi %s1210_s23, %s1485_s23   ;;  %s1142_s22 = sphi %s1208_s22, %s1484_s22   ;;  %s1138_s21 = sphi %s1206_s21, %s1483_s21  }
   0xd   : > { %p61_p0 = scmp.ne.s32.totalorder %s1142_s22, %s1138_s21  ;;  %p1240_p1 = scmp.eq.s32.totalorder %s774_s27, 0 }
   0xe   : > { %p1244_p2 = scmp.eq.s32.totalorder %s774_s27, 1  ;;  %p177_p3 = scmp.eq.s32.totalorder %s775_s28, 1 }
   0xf   : > { %s1469_s29 = scalar_select %p1240_p1, 1, 0 }
  0x10   : > { %p1250_p4 = por %p1240_p1, %p61_p0  ;;  %p776_p5 = scmp.ge.s32.totalorder %s1158_s26, 1 }
  0x11   : > { %p1255_p6 = por %p177_p3, %p61_p0  ;;  %p212_p7 = scmp.lt.s32.totalorder %s1158_s26, 3 }
  0x12   : > { %s1471_s7 = scalar_select %p1250_p4, 1, 0 }
  0x13   : > { %s1472_s8 = scalar_select %p1255_p6, 1, 0 }
  0x14   : > { %p1260_p8 = pnand %p776_p5, %p212_p7  ;;  %s1160_s10 = smov [#allocation5]  }
  0x15   : > { %s224_s11 = sshll.u32 %s1160_s10, 4  ;;  %s1161_s13 = smov [#allocation7]   ;;  %s225_s11 = int_to_ptr.vmem [resolvable:$true] %s224_s11 }
  0x16   : > { %p876_p9 = pneg %p1260_p8  ;;  %s240_s14 = sshll.u32 %s1161_s13, 4  ;;  %s241_s14 = int_to_ptr.vmem [resolvable:$true] %s240_s14 }
  0x17   : > { %s975_s15 = scalar_lea.vmem %s225_s11, 512  ;;  %p983_p5 = scmp.lt.s32.totalorder %s225_s11, %s225_s11 }
  0x18   : > { %p1269_p11 = pnand %p876_p9, %p1240_p1  ;;  %p976_p13 = scmp.ne.s32.totalorder %s225_s11, %s975_s15 }
  0x19   : > { %p984_p7 = scmp.lt.s32.totalorder %s975_s15, %s975_s15 }
  0x1a   : > { %p966_p12 = pneg %p1269_p11 }
  0x1b   : > { %p985_p10 = por %p984_p7, %p983_p5 }
  0x1c   : > { %p978_p0 = pnand %p976_p13, %p966_p12 }
  0x1e   : > { %p979_p3 = pneg %p978_p0 }
  0x20   : > { %p986_p9 = pnand %p985_p10, %p979_p3 }
  0x22   : > { %989 = shalt.err (!%p986_p9)
}
  0x23   : > { %s1162_s16 = smov 64   ;;  %s1163_s17 = smov 4  }
  0x24   : > { %s1475_s1 = sld [smem:[#allocation15_spill]]  ;;  %s1001_s20 = scalar_lea.vmem %s241_s14, 512 }
  0x25   : > { %p1002_p6 = scmp.ne.s32.totalorder %s241_s14, %s1001_s20  ;;  %p1009_p1 = scmp.lt.s32.totalorder %s241_s14, %s241_s14 }
  0x26   : > { %p1010_p4 = scmp.lt.s32.totalorder %s1001_s20, %s1001_s20 }
  0x27   : > { %p1004_p13 = pnand %p1002_p6, %p966_p12 }
  0x28   : > { %p1011_p5 = por %p1010_p4, %p1009_p1 }
  0x29   : > { %p1005_p0 = pneg %p1004_p13 }
  0x2a   : > { %879 = dma.hbm_to_vmem [thread:$0]  (!%p1269_p11), %s1475_s1, 512, %s225_s11, [#allocation6], %s1162_s16, %s1162_s16, %s1163_s17  }
  0x2b   : > { %p1012_p10 = pnand %p1011_p5, %p1005_p0 }
  0x2d   : > { %1015 = shalt.err (!%p1012_p10)
}
  0x2e   : > { %s1476_s3 = sld [smem:[#allocation16_spill]]  ;;  %s39_s10 = sadd.s32 1, %s1154_s25 }
  0x2f   : > { %s48_s11 = sadd.s32 1, %s1146_s23  ;;  %p41_p1 = scmp.ge.s32.totalorder %s39_s10, 2 }
  0x30   : > { %p55_p4 = scmp.ne.s32.totalorder %s1146_s23, %s1142_s22  ;;  %p56_p6 = scmp.eq.s32.totalorder %s1158_s26, 0 }
  0x31   : > { %p896_p12 = scmp.lt.s32.totalorder %s1158_s26, 2  ;;  %s1489_s10 = smov (%p41_p1, %s39_s10), 0 }
  0x32   : > { %p57_p3 = por %p56_p6, %p55_p4  ;;  %p1301_p7 = por %p1244_p2, %p55_p4 }
  0x33   : > { %s43_s13 = ssub.s32 %s1154_s25, %s1489_s10  ;;  %s257_s15 = sand.u32 1, %s1146_s23  }
  0x34   : > { %882 = dma.hbm_to_vmem [thread:$0]  (!%p1269_p11), %s1476_s3, 512, %s241_s14, [#allocation6], %s1162_s16, %s1162_s16, %s1163_s17  }
  0x35   : > { %p46_p9 = scmp.eq.s32.totalorder %s43_s13, 0  ;;  %s780_s14 = sshll.u32 %s257_s15, 3 }
  0x36   : > { %s781_s16 = sshll.u32 %s1154_s25, 7  ;;  %s261_s27 = scalar_lea.vmem [#allocation2], %s780_s14 }
  0x37   : > { %s1310_s17 = scalar_select %p46_p9, %s1146_s23, %s48_s11  }
  0x38   : > { %s267_s20 = scalar_lea.hbm %s1457_s0, %s781_s16  ;;  %s269_s28 = sshll.u32 %s261_s27, 4  ;;  %s270_s28 = int_to_ptr.vmem [resolvable:$true] %s269_s28 }
  0x39   : > { %p1317_p11 = pnand %p896_p12, %p57_p3  ;;  %s258_s1 = scalar_lea.sflag [#allocation3], %s257_s15 }
  0x3a   : > { %s1029_s13 = scalar_lea.vmem %s270_s28, 128  ;;  %s1164_s11 = smov [#allocation2]  }
  0x3b   : > { %p1018_p2 = pneg %p1317_p11  ;;  %p1030_p13 = scmp.ne.s32.totalorder %s270_s28, %s1029_s13 }
  0x3c   : > { %s1034_s3 = sshll.u32 %s1164_s11, 4  ;;  %s1035_s3 = int_to_ptr.vmem [resolvable:$false] %s1034_s3 }
  0x3d   : > { %p1032_p0 = pnand %p1030_p13, %p1018_p2  ;;  %s1036_s16 = scalar_lea.vmem %s1035_s3, 256 }
  0x3e   : > { %p1037_p10 = scmp.lt.s32.totalorder %s270_s28, %s1035_s3  ;;  %p1038_p1 = scmp.lt.s32.totalorder %s1036_s16, %s1029_s13 }
  0x3f   : > { %p1033_p5 = pneg %p1032_p0 }
  0x40   : > { %p1039_p4 = por %p1038_p1, %p1037_p10 }
  0x42   : > { %p1040_p6 = pnand %p1039_p4, %p1033_p5 }
  0x44   : > { %1043 = shalt.err (!%p1040_p6)
}
  0x45   : > { %886 = dma.hbm_to_vmem [thread:$0]  (!%p1317_p11), %s267_s20, 128, %s270_s28, %s258_s1  }
  0x46   : > { %278 = sbr.rel (%p1260_p8) target bundleno = 331 (0x14b), region = 40  ;;  %s1328_s15 = sand.u32 (!%p1260_p8), 1, %s1142_s22  }
  0x47   : > { %s1331_s14 = sshll.u32 (!%p1260_p8), %s1328_s15, 3  ;;  %s281_s3 = scalar_lea.sflag (!%p1260_p8), [#allocation3], %s1328_s15 }
  0x48   : > { %s284_s18 = scalar_lea.vmem (!%p1260_p8), [#allocation2], %s1331_s14  ;;  %p1479_p12 = scmp.ne.s32.totalorder (!%p1260_p8), %s1471_s7, 0 }
  0x4b   : > { %1121 = dma.done.wait (%p1479_p12), %s281_s3, 128  }
  0x4c   : > { %1123 = vsyncadd (%p1479_p12), %s281_s3, 4294967168  ;;  %p1480_p3 = scmp.ne.s32.totalorder %s1469_s29, 0 }
  0x4e   : > { %1125 = dma.done.wait (%p1480_p3), [#allocation6], 1024  }
  0x4f   : > { %1127 = vsyncadd (%p1480_p3), [#allocation6], 4294966272  ;;  %v1165_v0 = vmov 0.0   ;;  %vm1166_vm0 = vmmov 0   ;;  %v956_v1 = vld [vmem:[#allocation5 + $0x8] sm:$0xff]   ;;  %v958_v3 = vld [vmem:[#allocation5] sm:$0xff]  }
  0x50   : > { %830 = vmatprep.subr.bf16.mxu0 %v1165_v0  ;;  %838 = vmatprep.subr.bf16.mxu1 %v1165_v0  ;;  %v957_v2 = vld [vmem:[#allocation7 + $0x8] sm:$0xff]   ;;  %v959_v4 = vld [vmem:[#allocation7] sm:$0xff]   ;;  %v327_v5 = vld [vmem:[%s284_s18] sm:$0xff]  ;;  %vm352_vm1 = vcmask 261120   ;;  %vm460_vm2 = vcmask 257024   ;;  %s318_s19 = scalar_lea.vmem [#allocation8], %s1331_s14 }
  0x51   : > { %834 = vmatprep.mubr.msk.bf16.mxu0 %vm1166_vm0, %v1165_v0  ;;  %842 = vmatprep.mubr.msk.bf16.mxu1 %vm1166_vm0, %v1165_v0  ;;  %v328_v6 = vpack.c.bf16 %v327_v5, %v327_v5  ;;  %v960_v7 = vld [vmem:[#allocation5 + $0x18] sm:$0xff]   ;;  %v962_v9 = vld [vmem:[#allocation5 + $0x10] sm:$0xff]   ;;  %s325_s20 = scalar_lea.vmem [#allocation9], %s1331_s14  ;;  %s816_s30 = sshll.u32 %s1150_s24, 7 }
  0x52   : > { %831 = vmatpush3.bf16.msra.mxu0 %v956_v1  ;;  %839 = vmatpush3.bf16.msra.mxu1 %v957_v2  ;;  %v961_v8 = vld [vmem:[#allocation7 + $0x18] sm:$0xff]   ;;  %v963_v10 = vld [vmem:[#allocation7 + $0x10] sm:$0xff]   ;;  %s620_s13 = sshll.u32 %s318_s19, 4  ;;  %s637_s3 = sshll.u32 %s325_s20, 4  ;;  %s1373_s13 = int_to_ptr.vmem [resolvable:$true] %s620_s13  ;;  %s1380_s3 = int_to_ptr.vmem [resolvable:$true] %s637_s3 }
  0x53   : > { %832 = vmatprep.subr.bf16.mxu0 %v1165_v0  ;;  %840 = vmatprep.subr.bf16.mxu1 %v1165_v0  ;;  %v788_v11 = vld [vmem:[%s1459_s2] ss:$0 sm:$0xff]  ;;  %v797_v24 = vld [vmem:[%s1459_s2 + $0x1] ss:$0 sm:$0xff]  ;;  %s1371_s1 = scalar_lea.hbm %s1462_s5, %s816_s30  ;;  %s1378_s7 = scalar_lea.hbm %s1463_s6, %s816_s30 }
  0x54   : > { %v792_v12 = vld [vmem:[%s1461_s4] ss:$0 sm:$0xff]  ;;  %v802_v26 = vld [vmem:[%s1461_s4 + $0x1] ss:$0 sm:$0xff]  ;;  %s601_s9 = scalar_lea.sflag [#allocation4], %s1328_s15  ;;  %s1044_s27 = scalar_lea.vmem %s1373_s13, 128 }
  0x55   : > { %p1045_p8 = scmp.ne.s32.totalorder %s1373_s13, %s1044_s27  ;;  %s1167_s28 = smov [#allocation8]  }
  0x56   : > { %833 = vmatpush3.bf16.msra.mxu0 %v958_v3  ;;  %841 = vmatpush3.bf16.msra.mxu1 %v959_v4  ;;  %s1048_s11 = sshll.u32 %s1167_s28, 4  ;;  %s1049_s11 = int_to_ptr.vmem [resolvable:$false] %s1048_s11 }
  0x57   : > { %846 = vmatprep.subr.bf16.mxu0 %v1165_v0  ;;  %854 = vmatprep.subr.bf16.mxu1 %v1165_v0  ;;  %p1046_p9 = pnand %p1045_p8, %p1301_p7  ;;  %s1050_s16 = scalar_lea.vmem %s1049_s11, 256 }
  0x58   : > { %p1051_p2 = scmp.lt.s32.totalorder %s1373_s13, %s1049_s11  ;;  %p1052_p13 = scmp.lt.s32.totalorder %s1050_s16, %s1044_s27 }
  0x59   : > { %835 = vmatmul.mubr.msk.bf16.vlgmr.msra.gmra.mxu0 %vm352_vm1, %v328_v6  ;;  %843 = vmatmul.mubr.msk.bf16.vlgmr.msra.gmra.mxu1 %vm352_vm1, %v328_v6  ;;  %p1047_p11 = pneg %p1046_p9 }
  0x5a   : > { %847 = vmatpush3.bf16.msra.mxu0 %v960_v7  ;;  %855 = vmatpush3.bf16.msra.mxu1 %v961_v8  ;;  %p1053_p0 = por %p1052_p13, %p1051_p2 }
  0x5b   : > { %848 = vmatprep.subr.bf16.mxu0 %v1165_v0  ;;  %856 = vmatprep.subr.bf16.mxu1 %v1165_v0 }
  0x5c   : > { %850 = vmatprep.mubr.msk.bf16.mxu0 %vm1166_vm0, %v1165_v0  ;;  %858 = vmatprep.mubr.msk.bf16.mxu1 %vm1166_vm0, %v1165_v0  ;;  %p1054_p5 = pnand %p1053_p0, %p1047_p11 }
  0x5e   : > { %849 = vmatpush3.bf16.msra.mxu0 %v962_v9  ;;  %857 = vmatpush3.bf16.msra.mxu1 %v963_v10 }
  0x61   : > { %851 = vmatmul.mubr.msk.bf16.vlgmr.msra.gmra.mxu0 %vm352_vm1, %v328_v6  ;;  %859 = vmatmul.mubr.msk.bf16.vlgmr.msra.gmra.mxu1 %vm352_vm1, %v328_v6 }
 0x119   : > { %v390_v13 = vpop.f32.mrf.mxu0  ;;  %v453_v15 = vpop.f32.mrf.mxu1 }
 0x11a   : > { %v391_v14 = vadd.f32 %v788_v11, %v390_v13  ;;  %v454_v16 = vadd.f32 %v792_v12, %v453_v15 }
 0x11b   : > { %v836_v17 = vpop.f32.mrf.mxu0  ;;  %v844_v19 = vpop.f32.mrf.mxu1 }
 0x11c   : > { %v459_v18 = vpack.c.bf16 %v391_v14, %v391_v14  ;;  %v462_v20 = vpack.c.bf16 %v454_v16, %v454_v16 }
 0x11d   : > { %v393_v21 = vpop.f32.mrf.mxu0  ;;  %v456_v22 = vpop.f32.mrf.mxu1 }
 0x11e   : > { %461 = vst.msk [vmem:[%s318_s19] sm:$0xf] %vm460_vm2, %v459_v18  ;;  %463 = vst.msk [vmem:[%s325_s20] sm:$0xf] %vm460_vm2, %v462_v20 }
 0x11f   : > { %v837_v23 = vpop.f32.mrf.mxu0  ;;  %v845_v25 = vpop.f32.mrf.mxu1 }
 0x121   : > { %v523_v27 = vpop.f32.mrf.mxu0  ;;  %v588_v29 = vpop.f32.mrf.mxu1 }
 0x122   : > { %v524_v28 = vadd.f32 %v797_v24, %v523_v27  ;;  %v589_v30 = vadd.f32 %v802_v26, %v588_v29 }
 0x123   : > { %v852_v31 = vpop.f32.mrf.mxu0  ;;  %v860_v33 = vpop.f32.mrf.mxu1 }
 0x124   : > { %v594_v32 = vpack.c.bf16 %v524_v28, %v524_v28  ;;  %v597_v34 = vpack.c.bf16 %v589_v30, %v589_v30 }
 0x125   : > { %v526_v35 = vpop.f32.mrf.mxu0  ;;  %v591_v36 = vpop.f32.mrf.mxu1 }
 0x126   : > { %806 = vst.msk [vmem:[%s318_s19 + $0x4] sm:$0xf] %vm460_vm2, %v594_v32  ;;  %807 = vst.msk [vmem:[%s325_s20 + $0x4] sm:$0xf] %vm460_vm2, %v597_v34 }
 0x127   : > { %v853_v37 = vpop.f32.mrf.mxu0 }
 0x128   : > { %1057 = shalt.err (!%p1054_p5)
}
 0x129   : > { %s1058_s19 = scalar_lea.hbm %s1371_s1, 128  ;;  %s1062_s14 = scalar_lea.hbm %s1462_s5, 256 }
 0x12a   : > { %p1059_p10 = scmp.ne.s32.totalorder %s1371_s1, %s1058_s19  ;;  %p1063_p6 = scmp.lt.s32.totalorder %s1371_s1, %s1462_s5 }
 0x12b   : > { %p1064_p12 = scmp.lt.s32.totalorder %s1062_s14, %s1058_s19 }
 0x12c   : > { %p1060_p1 = pnand %p1059_p10, %p1301_p7 }
 0x12d   : > { %p1065_p3 = por %p1064_p12, %p1063_p6 }
 0x12e   : > { %p1061_p4 = pneg %p1060_p1 }
 0x130   : > { %p1066_p8 = pnand %p1065_p3, %p1061_p4 }
 0x132   : > { %1069 = shalt.err (!%p1066_p8)
}
 0x133   : > { %s1168_s29 = smov 64   ;;  %s1169_s27 = smov 4   ;;  %v861_v38 = vpop.f32.mrf.mxu1 }
 0x134   : > { %872 = dma.vmem_to_hbm [thread:$0]  (%p1301_p7), %s1373_s13, 128, %s1371_s1, %s601_s9, %s1168_s29, %s1168_s29, %s1169_s27  }
 0x135   : > { %s606_s28 = scalar_lea.sflag [#allocation10], %s1328_s15  ;;  %s1070_s11 = scalar_lea.vmem %s1380_s3, 128 }
 0x136   : > { %p1071_p9 = scmp.ne.s32.totalorder %s1380_s3, %s1070_s11  ;;  %s1170_s16 = smov [#allocation9]  }
 0x137   : > { %s1074_s19 = sshll.u32 %s1170_s16, 4  ;;  %s1075_s19 = int_to_ptr.vmem [resolvable:$false] %s1074_s19 }
 0x138   : > { %p1072_p11 = pnand %p1071_p9, %p1301_p7  ;;  %s1076_s20 = scalar_lea.vmem %s1075_s19, 256 }
 0x139   : > { %p1077_p13 = scmp.lt.s32.totalorder %s1380_s3, %s1075_s19  ;;  %p1078_p0 = scmp.lt.s32.totalorder %s1076_s20, %s1070_s11 }
 0x13a   : > { %p1073_p2 = pneg %p1072_p11 }
 0x13b   : > { %p1079_p5 = por %p1078_p0, %p1077_p13 }
 0x13d   : > { %p1080_p10 = pnand %p1079_p5, %p1073_p2 }
 0x13f   : > { %1083 = shalt.err (!%p1080_p10)
}
 0x140   : > { %s1084_s13 = scalar_lea.hbm %s1378_s7, 128  ;;  %s1088_s9 = scalar_lea.hbm %s1463_s6, 256 }
 0x141   : > { %p1085_p1 = scmp.ne.s32.totalorder %s1378_s7, %s1084_s13  ;;  %p1089_p12 = scmp.lt.s32.totalorder %s1378_s7, %s1463_s6 }
 0x142   : > { %p1090_p3 = scmp.lt.s32.totalorder %s1088_s9, %s1084_s13 }
 0x143   : > { %p1086_p4 = pnand %p1085_p1, %p1301_p7 }
 0x144   : > { %p1091_p8 = por %p1090_p3, %p1089_p12 }
 0x145   : > { %p1087_p6 = pneg %p1086_p4 }
 0x147   : > { %p1092_p9 = pnand %p1091_p8, %p1087_p6 }
 0x149   : > { %1095 = shalt.err (!%p1092_p9)
}
 0x14a   : > { %873 = dma.vmem_to_hbm [thread:$0]  (%p1301_p7), %s1380_s3, 128, %s1378_s7, %s606_s28, %s1168_s29, %s1168_s29, %s1169_s27  }
 0x14b PF: > { %s652_s18 = sand.u32 1, %s1138_s21   ;;  %p1481_p11 = scmp.ne.s32.totalorder %s1472_s8, 0 }
 0x14c   : > { %p1482_p2 = scmp.ge.s32.totalorder %s1158_s26, 2  ;;  %s653_s24 = scalar_lea.sflag [#allocation4], %s652_s18 }
 0x14e   : > { %p888_p13 = pnand %p1482_p2, %p1481_p11 }
 0x150   : > { %p889_p0 = pneg %p888_p13 }
 0x152   : > { %1129 = dma.done.wait (%p889_p0), %s653_s24, 128  }
 0x153   : > { %1131 = vsyncadd (%p889_p0), %s653_s24, 4294967168  ;;  %s662_s11 = scalar_lea.sflag [#allocation10], %s652_s18 }
 0x154   : > { %1133 = dma.done.wait (%p889_p0), %s662_s11, 128  }
 0x155   : > { %1135 = vsyncadd (%p889_p0), %s662_s11, 4294967168  ;;  %s27_s26 = sadd.s32 1, %s1158_s26   ;;  %s1483_s21 = smov %s1142_s22 }
 0x156   : > { %p24_p5 = scmp.ge.s32.totalorder %s27_s26, 4   ;;  %s1484_s22 = smov %s1146_s23 }
 0x157   : > { %s1485_s23 = smov %s1310_s17  ;;  %s1486_s24 = smov %s1154_s25 }
 0x158   : > { %s1487_s25 = smov %s1489_s10  ;;  %26 = sbr.rel (!%p24_p5) target bundleno = 12 (0xc), region = 116 }
 0x15d   :  { %667 = vsyncpa [#allocation3], 1 }
 0x15e   :  { %669 = vsyncpa [#allocation3 + $0x1], 1 }
 0x15f   :  { %670 = vsyncpa [#allocation6], 1 }
 0x160   :  { %671 = vsyncpa [#allocation4], 1 }
 0x161   :  { %673 = vsyncpa [#allocation4 + $0x1], 1 }
 0x162   :  { %674 = vsyncpa [#allocation10], 1 }
 0x163   :  { %676 = vsyncpa [#allocation10 + $0x1], 1 }

</bundles_post_ra>
